<compile_context>
chip_gen: v6e
topology: v6e:2x2x1
jax: 0.10.0
libtpu: 0.0.40
codegen_flags: <defaults>
</compile_context>

<pallas_src>
import math

import jax
import jax.numpy as jnp
from jax.experimental import pallas as pl
from jax.experimental.pallas import tpu as pltpu


def _round_up(x, m):
    return (x + m - 1) // m * m


def _make_scalar_mix_kernel(k_mix):
    def kernel(ws_ref, *refs):
        # ws_ref: (K,) f32 in SMEM, already softmax-normalized with gamma folded in.
        # refs[:k_mix]: K input tiles (tm, W); refs[k_mix]: output tile (tm, W).
        x_refs = refs[:k_mix]
        o_ref = refs[k_mix]
        acc = ws_ref[0] * x_refs[0][...].astype(jnp.float32)
        for k in range(1, k_mix):
            acc = acc + ws_ref[k] * x_refs[k][...].astype(jnp.float32)
        o_ref[...] = acc.astype(o_ref.dtype)

    return kernel


def _choose_view(shape, lane_target):
    """Pick a lane-dense 2-D view (rows, W) of a contiguous array of `shape`.

    The op is elementwise, so any contiguous reshape is valid (and free).
    Prefers W as a large multiple of 128 for unmasked, burst-friendly DMAs.
    """
    hidden = shape[-1]
    m = math.prod(shape[:-1]) if len(shape) > 1 else 1
    n = m * hidden

    if hidden % 128 == 0:
        # Merge leading rows into the lane axis to widen W (up to lane_target).
        g = 1
        for cand in range(max(1, min(m, lane_target // hidden)), 0, -1):
            if m % cand == 0:
                g = cand
                break
        return m // g, g * hidden

    if n % 128 == 0:
        # Fully flat re-tiling: largest W | n with W % 128 == 0, W <= lane_target.
        start = (min(n, lane_target) // 128) * 128
        for cand in range(start, 0, -128):
            if n % cand == 0:
                return n // cand, cand

    # Fallback: keep (m, hidden); hidden is the full-extent lane dim (legal,
    # but stores are lane-masked). Only hit when n is not a multiple of 128.
    return m, hidden


def scalar_mix(tensors, scalar_parameters, gamma, *,
               lane_target=4096, vmem_budget_bytes=32 << 20):
    """Pallas ScalarMix forward.

    tensors: list of K arrays, all the same shape and dtype.
    scalar_parameters: (K,) float32 raw (pre-softmax) weights.
    gamma: scalar (or shape-(1,)) float32.
    """
    k_mix = len(tensors)
    orig_shape = tensors[0].shape
    dtype = tensors[0].dtype
    for t in tensors:
        assert t.shape == orig_shape and t.dtype == dtype, (
            "all mixed tensors must share shape and dtype")
    itemsize = jnp.dtype(dtype).itemsize
    n_total = math.prod(orig_shape)

    # Fold gamma into the softmax-normalized weights (K scalar ops, wrapper-side).
    ws = jax.nn.softmax(jnp.asarray(scalar_parameters, jnp.float32).reshape(-1))
    ws = ws * jnp.asarray(gamma, jnp.float32).reshape(())

    # Lane-dense 2-D view (free reshape of a contiguous array).
    rows, width = _choose_view(orig_shape, lane_target)

    # Packed-sublane multiple for this dtype (f32: 8, bf16: 16, int8/fp8: 32).
    sub = {4: 8, 2: 16, 1: 32}.get(itemsize, 8)

    # VMEM-budgeted tile height: double-buffered working set is
    # 2 * (K inputs + 1 output) * tm * width * itemsize.
    bytes_per_row = 2 * (k_mix + 1) * width * itemsize
    tm = max(sub, min(1024, (vmem_budget_bytes // bytes_per_row) // sub * sub))
    # Ensure >= 2 grid steps where possible so the "parallel" axis shards
    # across both v7x TensorCores (harmless on single-TC v5e/v6e).
    if rows > sub:
        tm = min(tm, _round_up(-(-rows // 2), sub))
    if tm >= rows:
        tm = rows  # full-extent block is always legal, regardless of divisibility
    grid_m = -(-rows // tm)  # ragged final block: padded reads, masked stores

    working_bytes = 2 * (k_mix + 1) * tm * width * itemsize
    vmem_limit = int(min(40 << 20, max(working_bytes + (4 << 20), 24 << 20)))

    flat = [t.reshape(rows, width) for t in tensors]  # contiguous reshape: no HBM copy

    in_specs = [pl.BlockSpec(memory_space=pltpu.MemorySpace.SMEM)]
    in_specs += [pl.BlockSpec((tm, width), lambda i: (i, 0)) for _ in range(k_mix)]

    cost = pl.CostEstimate(
        flops=2 * k_mix * n_total,
        transcendentals=0,
        bytes_accessed=(k_mix + 1) * n_total * itemsize,
    )

    out = pl.pallas_call(
        _make_scalar_mix_kernel(k_mix),
        out_shape=jax.ShapeDtypeStruct((rows, width), dtype),
        grid=(grid_m,),
        in_specs=in_specs,
        out_specs=pl.BlockSpec((tm, width), lambda i: (i, 0)),
        compiler_params=pltpu.CompilerParams(
            dimension_semantics=("parallel",),
            vmem_limit_bytes=vmem_limit,
        ),
        cost_estimate=cost,
    )(ws, *flat)

    return out.reshape(orig_shape)


def scalar_mix_ref(tensors, scalar_parameters, gamma):
    ws = jax.nn.softmax(jnp.asarray(scalar_parameters, jnp.float32).reshape(-1))
    acc = sum(ws[k] * t.astype(jnp.float32) for k, t in enumerate(tensors))
    return (jnp.asarray(gamma, jnp.float32).reshape(()) * acc).astype(tensors[0].dtype)


if __name__ == "__main__":
    mixture_size = 4           # number of layers to mix
    B, S, H = 2, 8, 32         # batch, seq, hidden

    key = jax.random.PRNGKey(0)
    keys = jax.random.split(key, mixture_size)
    tensors = [jax.random.normal(k, (B, S, H), jnp.float32) for k in keys]

    # Deterministic parameter init, exactly as ScalarMix.__init__:
    # scalar_parameters = [0.0] * mixture_size, gamma = 1.0
    scalar_parameters = jnp.zeros((mixture_size,), jnp.float32)
    gamma = jnp.ones((1,), jnp.float32)

    out = jax.block_until_ready(scalar_mix(tensors, scalar_parameters, gamma))
    ref = scalar_mix_ref(tensors, scalar_parameters, gamma)
    assert out.shape == (B, S, H)
    assert jnp.allclose(out, ref, atol=1e-5, rtol=1e-5)

    # Second check: ragged grid (rows not a multiple of the tile) with
    # non-trivial weights/gamma, exercising the masked final block.
    shape2 = (3, 5, 7, 96)
    keys2 = jax.random.split(jax.random.PRNGKey(1), mixture_size)
    tensors2 = [jax.random.normal(k, shape2, jnp.float32) for k in keys2]
    params2 = jax.random.normal(jax.random.PRNGKey(2), (mixture_size,), jnp.float32)
    gamma2 = jnp.asarray(1.5, jnp.float32)
    out2 = jax.block_until_ready(scalar_mix(tensors2, params2, gamma2))
    ref2 = scalar_mix_ref(tensors2, params2, gamma2)
    assert out2.shape == shape2
    assert jnp.allclose(out2, ref2, atol=1e-5, rtol=1e-5)

    print("KERNEL_OK")
</pallas_src>

<mosaic_0001>
module attributes {stable_mosaic.version = 11 : i64} {
  func.func @kernel(%arg0: i32, %arg1: memref<4xf32, #tpu.memory_space<smem>>, %arg2: memref<1x512xf32, #tpu.memory_space<vmem>>, %arg3: memref<1x512xf32, #tpu.memory_space<vmem>>, %arg4: memref<1x512xf32, #tpu.memory_space<vmem>>, %arg5: memref<1x512xf32, #tpu.memory_space<vmem>>, %arg6: memref<1x512xf32, #tpu.memory_space<vmem>>) attributes {dimension_semantics = [#tpu.dimension_semantics<parallel>], iteration_bounds = array<i64: 1>, scalar_prefetch = 0 : i64, scratch_operands = 0 : i64, tpu.core_type = #tpu.core_type<tc>, window_params = [{transform_indices = @transform_0, window_bounds = array<i64: 4>}, {transform_indices = @transform_1, window_bounds = array<i64: 1, 512>}, {transform_indices = @transform_2, window_bounds = array<i64: 1, 512>}, {transform_indices = @transform_3, window_bounds = array<i64: 1, 512>}, {transform_indices = @transform_4, window_bounds = array<i64: 1, 512>}, {transform_indices = @transform_5, window_bounds = array<i64: 1, 512>}]} {
    %c0 = arith.constant 0 : index
    %0 = memref.load %arg1[%c0] : memref<4xf32, #tpu.memory_space<smem>>
    %c0_0 = arith.constant 0 : index
    %c0_1 = arith.constant 0 : index
    %1 = vector.load %arg2[%c0_0, %c0_1] : memref<1x512xf32, #tpu.memory_space<vmem>>, vector<1x512xf32>
    %2 = vector.broadcast %0 : f32 to vector<1x512xf32>
    %3 = arith.mulf %2, %1 : vector<1x512xf32>
    %c1 = arith.constant 1 : index
    %4 = memref.load %arg1[%c1] : memref<4xf32, #tpu.memory_space<smem>>
    %c0_2 = arith.constant 0 : index
    %c0_3 = arith.constant 0 : index
    %5 = vector.load %arg3[%c0_2, %c0_3] : memref<1x512xf32, #tpu.memory_space<vmem>>, vector<1x512xf32>
    %6 = vector.broadcast %4 : f32 to vector<1x512xf32>
    %7 = arith.mulf %6, %5 : vector<1x512xf32>
    %8 = arith.addf %3, %7 : vector<1x512xf32>
    %c2 = arith.constant 2 : index
    %9 = memref.load %arg1[%c2] : memref<4xf32, #tpu.memory_space<smem>>
    %c0_4 = arith.constant 0 : index
    %c0_5 = arith.constant 0 : index
    %10 = vector.load %arg4[%c0_4, %c0_5] : memref<1x512xf32, #tpu.memory_space<vmem>>, vector<1x512xf32>
    %11 = vector.broadcast %9 : f32 to vector<1x512xf32>
    %12 = arith.mulf %11, %10 : vector<1x512xf32>
    %13 = arith.addf %8, %12 : vector<1x512xf32>
    %c3 = arith.constant 3 : index
    %14 = memref.load %arg1[%c3] : memref<4xf32, #tpu.memory_space<smem>>
    %c0_6 = arith.constant 0 : index
    %c0_7 = arith.constant 0 : index
    %15 = vector.load %arg5[%c0_6, %c0_7] : memref<1x512xf32, #tpu.memory_space<vmem>>, vector<1x512xf32>
    %16 = vector.broadcast %14 : f32 to vector<1x512xf32>
    %17 = arith.mulf %16, %15 : vector<1x512xf32>
    %18 = arith.addf %13, %17 : vector<1x512xf32>
    %c0_8 = arith.constant 0 : index
    %c0_9 = arith.constant 0 : index
    %19 = vector.load %arg6[%c0_8, %c0_9] : memref<1x512xf32, #tpu.memory_space<vmem>>, vector<1x512xf32>
    tpu.vector_store %arg6[%c0_8, %c0_9], %18 {strides = array<i32>} : memref<1x512xf32, #tpu.memory_space<vmem>>, vector<1x512xf32>,
    return
  }
  func.func @transform_0(%arg0: i32) -> i32 {
    %c0_i32 = arith.constant 0 : i32
    %c0_i32_0 = arith.constant 0 : i32
    return %c0_i32 : i32
  }
  func.func @transform_1(%arg0: i32) -> (i32, i32) {
    %c0_i32 = arith.constant 0 : i32
    %c0_i32_0 = arith.constant 0 : i32
    return %arg0, %c0_i32 : i32, i32
  }
  func.func @transform_2(%arg0: i32) -> (i32, i32) {
    %c0_i32 = arith.constant 0 : i32
    %c0_i32_0 = arith.constant 0 : i32
    return %arg0, %c0_i32 : i32, i32
  }
  func.func @transform_3(%arg0: i32) -> (i32, i32) {
    %c0_i32 = arith.constant 0 : i32
    %c0_i32_0 = arith.constant 0 : i32
    return %arg0, %c0_i32 : i32, i32
  }
  func.func @transform_4(%arg0: i32) -> (i32, i32) {
    %c0_i32 = arith.constant 0 : i32
    %c0_i32_0 = arith.constant 0 : i32
    return %arg0, %c0_i32 : i32, i32
  }
  func.func @transform_5(%arg0: i32) -> (i32, i32) {
    %c0_i32 = arith.constant 0 : i32
    %c0_i32_0 = arith.constant 0 : i32
    return %arg0, %c0_i32 : i32, i32
  }
}

</mosaic_0001>

<bundles_post_ra>
// kernel: tpu_custom_call.1
= control target key start
LH: loop header
LB: loop body
LE: loop exit
PB: predicated region body
PF: predicated region fallthrough
CT: control target
= control target key end

     0   :  { %10 = vsyncpa [#allocation5], 0  ;;  %s265_s0 = inlined_call_operand.hbm [shape: f32[4], index: 0, kind: input, shape index: {}]   ;;  %s266_s1 = inlined_call_operand.hbm [shape: f32[1,512], index: 1, kind: input, shape index: {}]   ;;  %s267_s2 = inlined_call_operand.hbm [shape: f32[1,512], index: 2, kind: input, shape index: {}]   ;;  %s268_s3 = inlined_call_operand.vmem [shape: f32[1,512], index: 3, kind: input, shape index: {}]   ;;  %s269_s4 = inlined_call_operand.hbm [shape: f32[1,512], index: 4, kind: input, shape index: {}]   ;;  %s270_s5 = inlined_call_operand.hbm [shape: f32[1,512], index: 5, kind: output, shape index: {}]  }
   0x1   :  { %11 = vsyncpa [#allocation3], 0 }
   0x2   :  { %12 = vsyncpa [#allocation8], 0 }
   0x3   :  { %13 = vsyncpa [#allocation4], 0  ;;  %s212_s18 = smov [#allocation7]   ;;  %s213_s20 = smov [#allocation6]  }
   0x4   :  { %s38_s19 = sshll.u32 %s212_s18, 4  ;;  %s28_s21 = sshll.u32 %s213_s20, 4  ;;  %s39_s19 = int_to_ptr.vmem [resolvable:$true] %s38_s19  ;;  %s29_s21 = int_to_ptr.vmem [resolvable:$true] %s28_s21 }
   0x5   :  { %s124_s22 = scalar_lea.vmem %s39_s19, 64  ;;  %p129_p1 = scmp.lt.s32.totalorder %s39_s19, %s39_s19 }
   0x6   :  { %p125_p0 = scmp.ne.s32.totalorder %s39_s19, %s124_s22  ;;  %p130_p2 = scmp.lt.s32.totalorder %s124_s22, %s124_s22 }
   0x8   :  { %p131_p3 = por %p130_p2, %p129_p1 }
   0xa   :  { %p132_p4 = pnand %p131_p3, %p125_p0 }
   0xc   :  { %135 = shalt.err (!%p132_p4)
}
   0xd   :  { %41 = dma.hbm_to_vmem [thread:$0]  %s267_s2, 64, %s39_s19, [#allocation8]  }
   0xe   :  { %s214_s25 = smov [#allocation2]   ;;  %s152_s28 = scalar_lea.vmem %s29_s21, 64 }
   0xf   :  { %21 = dma.hbm_to_smem %s265_s0, 16, %s214_s25, [#allocation5]  }
  0x10   :  { %p153_p5 = scmp.ne.s32.totalorder %s29_s21, %s152_s28  ;;  %p157_p6 = scmp.lt.s32.totalorder %s29_s21, %s29_s21 }
  0x11   :  { %p158_p7 = scmp.lt.s32.totalorder %s152_s28, %s152_s28 }
  0x13   :  { %p159_p8 = por %p158_p7, %p157_p6 }
  0x15   :  { %p160_p9 = pnand %p159_p8, %p153_p5 }
  0x17   :  { %163 = shalt.err (!%p160_p9)
}
  0x18   :  { %31 = dma.hbm_to_vmem [thread:$0]  %s266_s1, 64, %s29_s21, [#allocation3]  }
  0x19   :  { %s215_s6 = smov [#allocation9]  }
  0x1a   :  { %s50_s7 = sshll.u32 %s215_s6, 4  ;;  %s51_s7 = int_to_ptr.vmem [resolvable:$true] %s50_s7 }
  0x1b   :  { %s172_s2 = scalar_lea.vmem %s51_s7, 64  ;;  %p177_p11 = scmp.lt.s32.totalorder %s51_s7, %s51_s7 }
  0x1c   :  { %p173_p10 = scmp.ne.s32.totalorder %s51_s7, %s172_s2  ;;  %p178_p12 = scmp.lt.s32.totalorder %s172_s2, %s172_s2 }
  0x1e   :  { %p179_p13 = por %p178_p12, %p177_p11 }
  0x20   :  { %p180_p0 = pnand %p179_p13, %p173_p10 }
  0x22   :  { %183 = shalt.err (!%p180_p0)
}
  0x23   :  { %53 = dma.hbm_to_vmem [thread:$0]  %s269_s4, 64, %s51_s7, [#allocation8]  }
  0x24   :  { %204 = dma.done.wait [#allocation5], 16  }
  0x25   :  { %205 = vsyncadd [#allocation5], 4294967280 }
  0x26   :  { %206 = dma.done.wait [#allocation3], 64  }
  0x27   :  { %207 = vsyncadd [#allocation3], 4294967232 }
  0x28   :  { %208 = dma.done.wait [#allocation8], 128  }
  0x29   :  { %209 = vsyncadd [#allocation8], 4294967168 }
  0x2a   :  { %66 = sfence }
  0x2b   :  { %s67_s1 = sld [smem:[#allocation2]]  ;;  %v68_v0 = vld [vmem:[#allocation6] sm:$0xf]  ;;  %v72_v1 = vld [vmem:[#allocation7] sm:$0xf]  ;;  %v86_v11 = vlaneseq  ;;  %s216_s4 = smov [#allocation10]  }
  0x2c   :  { %s108_s9 = sld [smem:[#allocation2 + $0x1]]  ;;  %v77_v3 = vld [vmem:[%s268_s3] sm:$0xf]  ;;  %v82_v6 = vld [vmem:[#allocation9] sm:$0xf]  ;;  %s97_s14 = sshll.u32 %s216_s4, 4  ;;  %s98_s14 = int_to_ptr.vmem [resolvable:$true] %s97_s14 }
  0x2d   :  { %s109_s10 = sld [smem:[#allocation2 + $0x2]]  ;;  %vm88_vm0 = vcmp.lt.s32.totalorder %v86_v11, 512  ;;  %s184_s15 = scalar_lea.vmem %s98_s14, 64 }
  0x2e   :  { %s110_s11 = sld [smem:[#allocation2 + $0x3]]  ;;  %p185_p1 = scmp.ne.s32.totalorder %s98_s14, %s184_s15 }
  0x2f   :  { %p189_p2 = scmp.lt.s32.totalorder %s98_s14, %s98_s14  ;;  %p190_p3 = scmp.lt.s32.totalorder %s184_s15, %s184_s15 }
  0x31   :  { %v69_v2 = vstv %s67_s1  ;;  %p191_p4 = por %p190_p3, %p189_p2 }
  0x32   :  { %v70_v4 = vmul.f32 %v69_v2, %v68_v0  ;;  %v73_v5 = vstv %s108_s9 }
  0x33   :  { %v74_v7 = vmul.f32 %v73_v5, %v72_v1  ;;  %v78_v8 = vstv %s109_s10  ;;  %p192_p5 = pnand %p191_p4, %p185_p1 }
  0x34   :  { %v79_v9 = vmul.f32 %v78_v8, %v77_v3  ;;  %v83_v10 = vstv %s110_s11 }
  0x35   :  { %v75_v12 = vadd.f32 %v74_v7, %v70_v4  ;;  %v84_v13 = vmul.f32 %v83_v10, %v82_v6 }
  0x37   :  { %v80_v14 = vadd.f32 %v79_v9, %v75_v12 }
  0x39   :  { %v85_v15 = vadd.f32 %v84_v13, %v80_v14 }
  0x3b   :  { %90 = vst.msk [vmem:[#allocation10] sm:$0xf] %vm88_vm0, %v85_v15 }
  0x3c   :  { %195 = shalt.err (!%p192_p5)
}
  0x3d   :  { %100 = dma.vmem_to_hbm [thread:$0]  %s98_s14, 64, %s270_s5, [#allocation4]  }
  0x3e   :  { %210 = dma.done.wait [#allocation4], 64  }
  0x3f   :  { %211 = vsyncadd [#allocation4], 4294967232 }
  0x40   :  { %104 = vsyncpa [#allocation3], 1 }
  0x41   :  { %105 = vsyncpa [#allocation8], 1 }
  0x42   :  { %106 = vsyncpa [#allocation4], 1 }
  0x43   :  { %107 = vsyncpa [#allocation5], 1 }

</bundles_post_ra>
